<compile_context>
chip_gen: v6e
topology: v6e:2x2x1
jax: 0.10.0
libtpu: 0.0.40
codegen_flags: <defaults>
</compile_context>

<pallas_src>
import functools

import jax
import jax.numpy as jnp
from jax import lax
from jax.experimental import pallas as pl
from jax.experimental.pallas import tpu as pltpu


def _round_up(x, m):
    return (x + m - 1) // m * m


def _vmem_capacity_bytes():
    """Physical VMEM of the local TPU, with a conservative fallback."""
    try:
        info = pltpu.get_tpu_info()
        for name in ("vmem_capacity_bytes", "vmem_size_bytes", "vmem_bytes"):
            cap = getattr(info, name, None)
            if cap:
                return int(cap)
    except Exception:
        pass
    return 64 * 1024 * 1024  # v7x-sized fallback (smallest of the targets)


def _choose_fact_block(fact_dim, k_text, k_img, o_pad, vmem_budget):
    """Largest #factors per weight tile s.t. double-buffered weights fit ~half budget."""
    per_factor_bytes = (k_text + k_img) * o_pad * 2  # bf16 weights, both projections
    fb = max(1, (vmem_budget // 2) // (2 * max(per_factor_bytes, 1)))
    return int(min(fact_dim, fb))


# --------------------------------------------------------------------------
# Kernel
# --------------------------------------------------------------------------
def _mfb_kernel(text_ref, img_ref, wt_ref, wi_ref, out_ref, *,
                fact_dim, fact_block):
    fblk = pl.program_id(1)

    @pl.when(fblk == 0)
    def _init():
        out_ref[...] = jnp.zeros_like(out_ref)

    # Bias is folded into the weights (last row) and the activations carry a
    # trailing ones column, so each projection is a single lane-dense MXU matmul
    # with f32 accumulation.
    acc = jnp.zeros(out_ref.shape, jnp.float32)
    for j in range(fact_block):  # static unroll over the factors in this block
        txt_proj = jnp.dot(text_ref[...], wt_ref[j],
                           preferred_element_type=jnp.float32)
        img_proj = jnp.dot(img_ref[...], wi_ref[j],
                           preferred_element_type=jnp.float32)
        acc = acc + txt_proj * img_proj

    out_ref[...] += acc  # out_ref is resident across the fact axis (accumulator)

    @pl.when(fblk == pl.num_programs(1) - 1)
    def _epilogue():
        mean = out_ref[...] * (1.0 / fact_dim)   # padded factors contribute 0
        sq = jnp.sum(mean * mean, axis=1, keepdims=True)
        # x / max(||x||, 1e-12)  ==  x * rsqrt(max(||x||^2, 1e-24))
        inv = lax.rsqrt(jnp.maximum(sq, 1e-24))
        out_ref[...] = mean * inv


# --------------------------------------------------------------------------
# Parameter packing: bias folded as an extra weight row (y = [x, 1] @ [W; b])
# --------------------------------------------------------------------------
def pack_params(wt, bt, wi, bi, *, fact_dim, output_dim,
                compute_dtype=jnp.bfloat16, fact_block=None):
    """wt: [Dt, F*O], bt: [F*O], wi: [Di, F*O], bi: [F*O]."""
    o_pad = _round_up(output_dim, 128)
    Dt, Di = wt.shape[0], wi.shape[0]

    if fact_block is None:
        budget = int(_vmem_capacity_bytes() * 0.6)
        fact_block = _choose_fact_block(fact_dim, Dt + 1, Di + 1, o_pad, budget)
    f_pad = _round_up(fact_dim, fact_block)

    def pack(w, b, in_dim):
        w = w.reshape(in_dim, fact_dim, output_dim)
        w = jnp.transpose(w, (1, 0, 2))                  # [F, K, O]
        b = b.reshape(fact_dim, 1, output_dim)           # [F, 1, O]
        wb = jnp.concatenate([w, b], axis=1)             # [F, K+1, O], bias = last row
        wb = jnp.pad(wb, ((0, f_pad - fact_dim), (0, 0), (0, o_pad - output_dim)))
        return wb.astype(compute_dtype)

    return {"wt": pack(wt, bt, Dt), "wi": pack(wi, bi, Di),
            "fact_block": int(fact_block), "o_pad": int(o_pad)}


# --------------------------------------------------------------------------
# Wrapper
# --------------------------------------------------------------------------
def mfb_fusion(text_embeddings, image_embeddings, packed, *,
               fact_dim, output_dim, batch_tile=512,
               compute_dtype=jnp.bfloat16):
    B, Dt = text_embeddings.shape
    _, Di = image_embeddings.shape
    wt, wi = packed["wt"], packed["wi"]
    fact_block = packed["fact_block"]
    f_pad, Kt, o_pad = wt.shape          # Kt = Dt + 1 (ones column / bias row)
    Ki = wi.shape[1]                      # Ki = Di + 1
    num_f_blocks = f_pad // fact_block

    cap = _vmem_capacity_bytes()
    budget = int(cap * 0.6)

    # bf16 vreg tile is (16, 128): keep the batch tile a multiple of 16.
    tb = _round_up(min(batch_tile, _round_up(B, 16)), 16)

    # Shrink tb if the double-buffered working set would blow the VMEM budget.
    def _vmem_need(t):
        act = 2 * t * (Kt + Ki) * 2            # text + image tiles, 2 buffers, bf16
        out = 2 * t * o_pad * 4                # f32 output/accumulator
        wgt = 2 * fact_block * (Kt + Ki) * o_pad * 2
        return act + out + wgt
    while tb > 16 and _vmem_need(tb) > budget:
        tb = max(16, _round_up(tb // 2, 16))

    Bp = _round_up(B, tb)
    # v7x megacore: the batch axis is the "parallel" axis — keep >= 2 blocks.
    if Bp // tb == 1 and tb > 16:
        half = _round_up(max(16, tb // 2), 16)
        if _round_up(B, half) // half >= 2:
            tb, Bp = half, _round_up(B, half)

    ones = jnp.ones((Bp, 1), compute_dtype)
    text = jnp.concatenate(
        [jnp.pad(text_embeddings, ((0, Bp - B), (0, 0))).astype(compute_dtype), ones],
        axis=1)
    img = jnp.concatenate(
        [jnp.pad(image_embeddings, ((0, Bp - B), (0, 0))).astype(compute_dtype), ones],
        axis=1)

    nb = Bp // tb
    grid = (nb, num_f_blocks)   # batch (parallel), fact (reduction, last)

    # Weights are re-fetched whenever their block index changes: once total if the
    # fact grid is a single block, otherwise once per (batch block).
    weight_bytes = (wt.size + wi.size) * 2
    weight_stream = weight_bytes * (1 if num_f_blocks == 1 else nb)
    bytes_accessed = (text.size * 2 + img.size * 2 + weight_stream + Bp * o_pad * 4)
    flops = 2 * Bp * (Kt + Ki) * f_pad * o_pad + 2 * Bp * f_pad * o_pad + 3 * Bp * o_pad

    kernel = functools.partial(_mfb_kernel, fact_dim=fact_dim,
                               fact_block=fact_block)

    out = pl.pallas_call(
        kernel,
        out_shape=jax.ShapeDtypeStruct((Bp, o_pad), jnp.float32),
        grid_spec=pltpu.PrefetchScalarGridSpec(
            num_scalar_prefetch=0,
            grid=grid,
            in_specs=[
                pl.BlockSpec((tb, Kt), lambda b, f: (b, 0)),                 # text (+1s)
                pl.BlockSpec((tb, Ki), lambda b, f: (b, 0)),                 # image (+1s)
                pl.BlockSpec((fact_block, Kt, o_pad), lambda b, f: (f, 0, 0)),  # W_text|b
                pl.BlockSpec((fact_block, Ki, o_pad), lambda b, f: (f, 0, 0)),  # W_image|b
            ],
            out_specs=pl.BlockSpec((tb, o_pad), lambda b, f: (b, 0)),
        ),
        compiler_params=pltpu.CompilerParams(
            dimension_semantics=("parallel", "arbitrary"),
            vmem_limit_bytes=int(cap * 0.7),
        ),
        cost_estimate=pl.CostEstimate(
            flops=int(flops), transcendentals=int(Bp),
            bytes_accessed=int(bytes_accessed)),
    )(text, img, wt, wi)

    return out[:B, :output_dim]


# --------------------------------------------------------------------------
# Init + plain-JAX reference
# --------------------------------------------------------------------------
def init_params(key, image_embed_dim, text_embed_dim, fact_dim, output_dim):
    FO = fact_dim * output_dim
    k1, k2, k3, k4 = jax.random.split(key, 4)
    bi_bound = 1.0 / jnp.sqrt(image_embed_dim)
    bt_bound = 1.0 / jnp.sqrt(text_embed_dim)
    return {
        "wi": jax.random.uniform(k1, (image_embed_dim, FO), jnp.float32,
                                 -bi_bound, bi_bound),
        "bi": jax.random.uniform(k2, (FO,), jnp.float32, -bi_bound, bi_bound),
        "wt": jax.random.uniform(k3, (text_embed_dim, FO), jnp.float32,
                                 -bt_bound, bt_bound),
        "bt": jax.random.uniform(k4, (FO,), jnp.float32, -bt_bound, bt_bound),
    }


def mfb_fusion_ref(text, image, params, *, fact_dim, output_dim,
                   compute_dtype=None):
    wt, wi, bt, bi = params["wt"], params["wi"], params["bt"], params["bi"]
    if compute_dtype is not None:
        text, image = text.astype(compute_dtype), image.astype(compute_dtype)
        wt, wi = wt.astype(compute_dtype), wi.astype(compute_dtype)
        bt, bi = bt.astype(compute_dtype), bi.astype(compute_dtype)
    img_proj = jnp.dot(image, wi, preferred_element_type=jnp.float32) + bi.astype(jnp.float32)
    txt_proj = jnp.dot(text, wt, preferred_element_type=jnp.float32) + bt.astype(jnp.float32)
    prod = (img_proj * txt_proj).reshape(-1, fact_dim, output_dim)
    mean = prod.mean(axis=1)
    norm = jnp.sqrt(jnp.sum(mean * mean, axis=1, keepdims=True))
    return mean / jnp.maximum(norm, 1e-12)


if __name__ == "__main__":
    B = 2
    image_embed_dim = 32
    text_embed_dim = 16
    fact_dim = 4
    output_dim = 32

    key = jax.random.PRNGKey(0)
    kp, kt, ki = jax.random.split(key, 3)
    params = init_params(kp, image_embed_dim, text_embed_dim, fact_dim, output_dim)
    text_embeddings = jax.random.normal(kt, (B, text_embed_dim), jnp.float32)
    image_embeddings = jax.random.normal(ki, (B, image_embed_dim), jnp.float32)

    packed = pack_params(params["wt"], params["bt"], params["wi"], params["bi"],
                         fact_dim=fact_dim, output_dim=output_dim,
                         compute_dtype=jnp.bfloat16)

    out = mfb_fusion(text_embeddings, image_embeddings, packed,
                     fact_dim=fact_dim, output_dim=output_dim,
                     compute_dtype=jnp.bfloat16)
    out = jax.block_until_ready(out)
    assert out.shape == (B, output_dim)

    # Reference with the same bf16 inputs / f32 accumulation (tight tolerance).
    ref_bf16 = mfb_fusion_ref(text_embeddings, image_embeddings, params,
                              fact_dim=fact_dim, output_dim=output_dim,
                              compute_dtype=jnp.bfloat16)
    assert jnp.allclose(out, ref_bf16, atol=1e-2, rtol=1e-2), "mismatch vs bf16 ref"

    # Full-f32 reference (looser tolerance, semantics sanity check).
    ref_f32 = mfb_fusion_ref(text_embeddings, image_embeddings, params,
                             fact_dim=fact_dim, output_dim=output_dim)
    assert jnp.allclose(out, ref_f32, atol=2e-2, rtol=2e-2), "mismatch vs f32 ref"

    print("KERNEL_OK")
</pallas_src>

<mosaic_0001>
module attributes {stable_mosaic.version = 11 : i64} {
  func.func @_mfb_kernel(%arg0: i32, %arg1: i32, %arg2: memref<16x17xbf16, #tpu.memory_space<vmem>>, %arg3: memref<16x33xbf16, #tpu.memory_space<vmem>>, %arg4: memref<4x17x128xbf16, #tpu.memory_space<vmem>>, %arg5: memref<4x33x128xbf16, #tpu.memory_space<vmem>>, %arg6: memref<16x128xf32, #tpu.memory_space<vmem>>) attributes {dimension_semantics = [#tpu.dimension_semantics<parallel>, #tpu.dimension_semantics<arbitrary>], iteration_bounds = array<i64: 1, 1>, scalar_prefetch = 0 : i64, scratch_operands = 0 : i64, tpu.core_type = #tpu.core_type<tc>, window_params = [{transform_indices = @transform_0, window_bounds = array<i64: 16, 17>}, {transform_indices = @transform_1, window_bounds = array<i64: 16, 33>}, {transform_indices = @transform_2, window_bounds = array<i64: 4, 17, 128>}, {transform_indices = @transform_3, window_bounds = array<i64: 4, 33, 128>}, {transform_indices = @transform_4, window_bounds = array<i64: 16, 128>}]} {
    %c0_i32 = arith.constant 0 : i32
    %0 = arith.cmpi eq, %arg1, %c0_i32 : i32
    %1 = arith.extui %0 : i1 to i32
    %c0_i32_0 = arith.constant 0 : i32
    %2 = arith.cmpi ne, %1, %c0_i32_0 : i32
    scf.if %2 {
      %cst_51 = arith.constant 0.000000e+00 : f32
      %50 = vector.broadcast %cst_51 : f32 to vector<16x128xf32>
      %c0_52 = arith.constant 0 : index
      %c0_53 = arith.constant 0 : index
      %51 = vector.load %arg6[%c0_52, %c0_53] : memref<16x128xf32, #tpu.memory_space<vmem>>, vector<16x128xf32>
      tpu.vector_store %arg6[%c0_52, %c0_53], %50 {strides = array<i32>} : memref<16x128xf32, #tpu.memory_space<vmem>>, vector<16x128xf32>,
    } else {
    }
    %cst = arith.constant 0.000000e+00 : f32
    %3 = vector.broadcast %cst : f32 to vector<16x128xf32>
    %c0 = arith.constant 0 : index
    %c0_1 = arith.constant 0 : index
    %4 = vector.load %arg2[%c0, %c0_1] : memref<16x17xbf16, #tpu.memory_space<vmem>>, vector<16x17xbf16>
    %c0_2 = arith.constant 0 : index
    %c0_3 = arith.constant 0 : index
    %c0_4 = arith.constant 0 : index
    %5 = vector.load %arg4[%c0_2, %c0_3, %c0_4] : memref<4x17x128xbf16, #tpu.memory_space<vmem>>, vector<1x17x128xbf16>
    %6 = vector.shape_cast %5 : vector<1x17x128xbf16> to vector<17x128xbf16>
    %cst_5 = arith.constant dense<0.000000e+00> : vector<16x128xf32>
    %7 = tpu.matmul %4, %6, %cst_5 {dimension_numbers = #tpu.dot_dimension_numbers<[1], [0], [0], [1], [0, 0, 1, 1], [], []>} : vector<16x17xbf16>, vector<17x128xbf16>, vector<16x128xf32> -> vector<16x128xf32>
    %c0_6 = arith.constant 0 : index
    %c0_7 = arith.constant 0 : index
    %8 = vector.load %arg3[%c0_6, %c0_7] : memref<16x33xbf16, #tpu.memory_space<vmem>>, vector<16x33xbf16>
    %c0_8 = arith.constant 0 : index
    %c0_9 = arith.constant 0 : index
    %c0_10 = arith.constant 0 : index
    %9 = vector.load %arg5[%c0_8, %c0_9, %c0_10] : memref<4x33x128xbf16, #tpu.memory_space<vmem>>, vector<1x33x128xbf16>
    %10 = vector.shape_cast %9 : vector<1x33x128xbf16> to vector<33x128xbf16>
    %cst_11 = arith.constant dense<0.000000e+00> : vector<16x128xf32>
    %11 = tpu.matmul %8, %10, %cst_11 {dimension_numbers = #tpu.dot_dimension_numbers<[1], [0], [0], [1], [0, 0, 1, 1], [], []>} : vector<16x33xbf16>, vector<33x128xbf16>, vector<16x128xf32> -> vector<16x128xf32>
    %12 = arith.mulf %7, %11 : vector<16x128xf32>
    %13 = arith.addf %3, %12 : vector<16x128xf32>
    %c0_12 = arith.constant 0 : index
    %c0_13 = arith.constant 0 : index
    %14 = vector.load %arg2[%c0_12, %c0_13] : memref<16x17xbf16, #tpu.memory_space<vmem>>, vector<16x17xbf16>
    %c1 = arith.constant 1 : index
    %c0_14 = arith.constant 0 : index
    %c0_15 = arith.constant 0 : index
    %15 = vector.load %arg4[%c1, %c0_14, %c0_15] : memref<4x17x128xbf16, #tpu.memory_space<vmem>>, vector<1x17x128xbf16>
    %16 = vector.shape_cast %15 : vector<1x17x128xbf16> to vector<17x128xbf16>
    %cst_16 = arith.constant dense<0.000000e+00> : vector<16x128xf32>
    %17 = tpu.matmul %14, %16, %cst_16 {dimension_numbers = #tpu.dot_dimension_numbers<[1], [0], [0], [1], [0, 0, 1, 1], [], []>} : vector<16x17xbf16>, vector<17x128xbf16>, vector<16x128xf32> -> vector<16x128xf32>
    %c0_17 = arith.constant 0 : index
    %c0_18 = arith.constant 0 : index
    %18 = vector.load %arg3[%c0_17, %c0_18] : memref<16x33xbf16, #tpu.memory_space<vmem>>, vector<16x33xbf16>
    %c1_19 = arith.constant 1 : index
    %c0_20 = arith.constant 0 : index
    %c0_21 = arith.constant 0 : index
    %19 = vector.load %arg5[%c1_19, %c0_20, %c0_21] : memref<4x33x128xbf16, #tpu.memory_space<vmem>>, vector<1x33x128xbf16>
    %20 = vector.shape_cast %19 : vector<1x33x128xbf16> to vector<33x128xbf16>
    %cst_22 = arith.constant dense<0.000000e+00> : vector<16x128xf32>
    %21 = tpu.matmul %18, %20, %cst_22 {dimension_numbers = #tpu.dot_dimension_numbers<[1], [0], [0], [1], [0, 0, 1, 1], [], []>} : vector<16x33xbf16>, vector<33x128xbf16>, vector<16x128xf32> -> vector<16x128xf32>
    %22 = arith.mulf %17, %21 : vector<16x128xf32>
    %23 = arith.addf %13, %22 : vector<16x128xf32>
    %c0_23 = arith.constant 0 : index
    %c0_24 = arith.constant 0 : index
    %24 = vector.load %arg2[%c0_23, %c0_24] : memref<16x17xbf16, #tpu.memory_space<vmem>>, vector<16x17xbf16>
    %c2 = arith.constant 2 : index
    %c0_25 = arith.constant 0 : index
    %c0_26 = arith.constant 0 : index
    %25 = vector.load %arg4[%c2, %c0_25, %c0_26] : memref<4x17x128xbf16, #tpu.memory_space<vmem>>, vector<1x17x128xbf16>
    %26 = vector.shape_cast %25 : vector<1x17x128xbf16> to vector<17x128xbf16>
    %cst_27 = arith.constant dense<0.000000e+00> : vector<16x128xf32>
    %27 = tpu.matmul %24, %26, %cst_27 {dimension_numbers = #tpu.dot_dimension_numbers<[1], [0], [0], [1], [0, 0, 1, 1], [], []>} : vector<16x17xbf16>, vector<17x128xbf16>, vector<16x128xf32> -> vector<16x128xf32>
    %c0_28 = arith.constant 0 : index
    %c0_29 = arith.constant 0 : index
    %28 = vector.load %arg3[%c0_28, %c0_29] : memref<16x33xbf16, #tpu.memory_space<vmem>>, vector<16x33xbf16>
    %c2_30 = arith.constant 2 : index
    %c0_31 = arith.constant 0 : index
    %c0_32 = arith.constant 0 : index
    %29 = vector.load %arg5[%c2_30, %c0_31, %c0_32] : memref<4x33x128xbf16, #tpu.memory_space<vmem>>, vector<1x33x128xbf16>
    %30 = vector.shape_cast %29 : vector<1x33x128xbf16> to vector<33x128xbf16>
    %cst_33 = arith.constant dense<0.000000e+00> : vector<16x128xf32>
    %31 = tpu.matmul %28, %30, %cst_33 {dimension_numbers = #tpu.dot_dimension_numbers<[1], [0], [0], [1], [0, 0, 1, 1], [], []>} : vector<16x33xbf16>, vector<33x128xbf16>, vector<16x128xf32> -> vector<16x128xf32>
    %32 = arith.mulf %27, %31 : vector<16x128xf32>
    %33 = arith.addf %23, %32 : vector<16x128xf32>
    %c0_34 = arith.constant 0 : index
    %c0_35 = arith.constant 0 : index
    %34 = vector.load %arg2[%c0_34, %c0_35] : memref<16x17xbf16, #tpu.memory_space<vmem>>, vector<16x17xbf16>
    %c3 = arith.constant 3 : index
    %c0_36 = arith.constant 0 : index
    %c0_37 = arith.constant 0 : index
    %35 = vector.load %arg4[%c3, %c0_36, %c0_37] : memref<4x17x128xbf16, #tpu.memory_space<vmem>>, vector<1x17x128xbf16>
    %36 = vector.shape_cast %35 : vector<1x17x128xbf16> to vector<17x128xbf16>
    %cst_38 = arith.constant dense<0.000000e+00> : vector<16x128xf32>
    %37 = tpu.matmul %34, %36, %cst_38 {dimension_numbers = #tpu.dot_dimension_numbers<[1], [0], [0], [1], [0, 0, 1, 1], [], []>} : vector<16x17xbf16>, vector<17x128xbf16>, vector<16x128xf32> -> vector<16x128xf32>
    %c0_39 = arith.constant 0 : index
    %c0_40 = arith.constant 0 : index
    %38 = vector.load %arg3[%c0_39, %c0_40] : memref<16x33xbf16, #tpu.memory_space<vmem>>, vector<16x33xbf16>
    %c3_41 = arith.constant 3 : index
    %c0_42 = arith.constant 0 : index
    %c0_43 = arith.constant 0 : index
    %39 = vector.load %arg5[%c3_41, %c0_42, %c0_43] : memref<4x33x128xbf16, #tpu.memory_space<vmem>>, vector<1x33x128xbf16>
    %40 = vector.shape_cast %39 : vector<1x33x128xbf16> to vector<33x128xbf16>
    %cst_44 = arith.constant dense<0.000000e+00> : vector<16x128xf32>
    %41 = tpu.matmul %38, %40, %cst_44 {dimension_numbers = #tpu.dot_dimension_numbers<[1], [0], [0], [1], [0, 0, 1, 1], [], []>} : vector<16x33xbf16>, vector<33x128xbf16>, vector<16x128xf32> -> vector<16x128xf32>
    %42 = arith.mulf %37, %41 : vector<16x128xf32>
    %43 = arith.addf %33, %42 : vector<16x128xf32>
    %c0_45 = arith.constant 0 : index
    %c0_46 = arith.constant 0 : index
    %44 = vector.load %arg6[%c0_45, %c0_46] : memref<16x128xf32, #tpu.memory_space<vmem>>, vector<16x128xf32>
    %45 = arith.addf %44, %43 : vector<16x128xf32>
    %c0_47 = arith.constant 0 : index
    %c0_48 = arith.constant 0 : index
    %46 = vector.load %arg6[%c0_47, %c0_48] : memref<16x128xf32, #tpu.memory_space<vmem>>, vector<16x128xf32>
    tpu.vector_store %arg6[%c0_47, %c0_48], %45 {strides = array<i32>} : memref<16x128xf32, #tpu.memory_space<vmem>>, vector<16x128xf32>,
    %c0_i32_49 = arith.constant 0 : i32
    %47 = arith.cmpi eq, %arg1, %c0_i32_49 : i32
    %48 = arith.extui %47 : i1 to i32
    %c0_i32_50 = arith.constant 0 : i32
    %49 = arith.cmpi ne, %48, %c0_i32_50 : i32
    scf.if %49 {
      %c0_51 = arith.constant 0 : index
      %c0_52 = arith.constant 0 : index
      %50 = vector.load %arg6[%c0_51, %c0_52] : memref<16x128xf32, #tpu.memory_space<vmem>>, vector<16x128xf32>
      %cst_53 = arith.constant 2.500000e-01 : f32
      %51 = vector.broadcast %cst_53 : f32 to vector<16x128xf32>
      %52 = arith.mulf %50, %51 : vector<16x128xf32>
      %53 = arith.mulf %52, %52 : vector<16x128xf32>
      %cst_54 = arith.constant dense<0.000000e+00> : vector<16xf32>
      %54 = vector.multi_reduction <add>, %53, %cst_54 [1] : vector<16x128xf32> to vector<16xf32>
      %55 = vector.shape_cast %54 : vector<16xf32> to vector<16x1xf32>
      %cst_55 = arith.constant 1.000000e-24 : f32
      %56 = vector.broadcast %cst_55 : f32 to vector<16x1xf32>
      %57 = arith.maximumf %55, %56 : vector<16x1xf32>
      %58 = math.rsqrt %57 : vector<16x1xf32>
      %59 = vector.broadcast %58 : vector<16x1xf32> to vector<16x128xf32>
      %60 = arith.mulf %52, %59 : vector<16x128xf32>
      %c0_56 = arith.constant 0 : index
      %c0_57 = arith.constant 0 : index
      %61 = vector.load %arg6[%c0_56, %c0_57] : memref<16x128xf32, #tpu.memory_space<vmem>>, vector<16x128xf32>
      tpu.vector_store %arg6[%c0_56, %c0_57], %60 {strides = array<i32>} : memref<16x128xf32, #tpu.memory_space<vmem>>, vector<16x128xf32>,
    } else {
    }
    return
  }
  func.func @transform_0(%arg0: i32, %arg1: i32) -> (i32, i32) {
    %c0_i32 = arith.constant 0 : i32
    %c0_i32_0 = arith.constant 0 : i32
    return %arg0, %c0_i32 : i32, i32
  }
  func.func @transform_1(%arg0: i32, %arg1: i32) -> (i32, i32) {
    %c0_i32 = arith.constant 0 : i32
    %c0_i32_0 = arith.constant 0 : i32
    return %arg0, %c0_i32 : i32, i32
  }
  func.func @transform_2(%arg0: i32, %arg1: i32) -> (i32, i32, i32) {
    %c0_i32 = arith.constant 0 : i32
    %c0_i32_0 = arith.constant 0 : i32
    %c0_i32_1 = arith.constant 0 : i32
    return %arg1, %c0_i32, %c0_i32_0 : i32, i32, i32
  }
  func.func @transform_3(%arg0: i32, %arg1: i32) -> (i32, i32, i32) {
    %c0_i32 = arith.constant 0 : i32
    %c0_i32_0 = arith.constant 0 : i32
    %c0_i32_1 = arith.constant 0 : i32
    return %arg1, %c0_i32, %c0_i32_0 : i32, i32, i32
  }
  func.func @transform_4(%arg0: i32, %arg1: i32) -> (i32, i32) {
    %c0_i32 = arith.constant 0 : i32
    %c0_i32_0 = arith.constant 0 : i32
    return %arg0, %c0_i32 : i32, i32
  }
}

</mosaic_0001>

<bundles_post_ra>
// kernel: tpu_custom_call.1
= control target key start
LH: loop header
LB: loop body
LE: loop exit
PB: predicated region body
PF: predicated region fallthrough
CT: control target
= control target key end

     0   :  { %v803_v1 = vmov 0.0   ;;  %vm48_vm0 = vcmask 1040384   ;;  %v804_v2 = vmov 0   ;;  %vm805_vm1 = vmmov 0   ;;  %s963_s0 = inlined_call_operand.vmem [shape: bf16[16,17], index: 0, kind: input, shape index: {}]   ;;  %s964_s1 = inlined_call_operand.vmem [shape: bf16[16,33], index: 1, kind: input, shape index: {}]   ;;  %s965_s2 = inlined_call_operand.vmem [shape: bf16[4,17,128], index: 2, kind: input, shape index: {}]   ;;  %s966_s3 = inlined_call_operand.vmem [shape: bf16[4,33,128], index: 3, kind: input, shape index: {}]   ;;  %s967_s4 = inlined_call_operand.hbm [shape: f32[16,128], index: 4, kind: output, shape index: {}]  }
   0x1   :  { %v755_v0 = vld [vmem:[%s965_s2 + $0x8] ss:$0 sps:$4 sm:$0x11]   ;;  %677 = vmatprep.subr.bf16.mxu0 %v803_v1  ;;  %685 = vmatprep.subr.bf16.mxu1 %v803_v1  ;;  %v839_v3 = vsel %vm48_vm0, 65535, %v804_v2  ;;  %v757_v7 = vld [vmem:[%s965_s2] sm:$0xff]   ;;  %vm44_vm2 = vcmask 138240  }
   0x2   :  { %v756_v4 = vld [vmem:[%s966_s3 + $0x10] ss:$0 sps:$4 sm:$0x11]   ;;  %v52_v5 = vand.u32 %v755_v0, %v839_v3  ;;  %681 = vmatprep.mubr.msk.bf16.mxu0 %vm805_vm1, %v803_v1  ;;  %691 = vmatprep.mubr.msk.bf16.mxu1 %vm805_vm1, %v803_v1  ;;  %v758_v8 = vld [vmem:[%s966_s3 + $0x8] sm:$0xff]   ;;  %v759_v10 = vld [vmem:[%s963_s0] sm:$0xff]   ;;  %vm122_vm3 = vcmask 269312  }
   0x3   :  { %v127_v6 = vand.u32 %v756_v4, %v839_v3  ;;  %v761_v9 = vld [vmem:[%s965_s2 + $0x14] ss:$0 sps:$4 sm:$0x11]   ;;  %v760_v11 = vld [vmem:[%s966_s3] sm:$0xff]   ;;  %v763_v15 = vld [vmem:[%s965_s2 + $0xc] sm:$0xff]  }
   0x4   :  { %678 = vmatpush3.bf16.msra.mxu0 %v52_v5  ;;  %v188_v12 = vand.u32 %v761_v9, %v839_v3  ;;  %v764_v13 = vld [vmem:[%s966_s3 + $0x24] ss:$0 sps:$4 sm:$0x11]   ;;  %v766_v16 = vld [vmem:[%s965_s2 + $0x20] ss:$0 sps:$4 sm:$0x11]  }
   0x5   :  { %686 = vmatpush3.bf16.msra.mxu1 %v127_v6  ;;  %679 = vmatprep.subr.bf16.mxu0 %v803_v1  ;;  %v876_v14 = vld [vmem:[%s964_s1] sm:$0xff]   ;;  %v253_v17 = vand.u32 %v764_v13, %v839_v3  ;;  %v314_v18 = vand.u32 %v766_v16, %v839_v3 }
   0x6   :  { %687 = vmatprep.subr.bf16.mxu1 %v803_v1  ;;  %v765_v19 = vld [vmem:[%s966_s3 + $0x1c] sm:$0xff]  }
   0x8   :  { %680 = vmatpush3.bf16.msra.mxu0 %v757_v7 }
   0x9   :  { %688 = vmatpush3.bf16.msra.mxu1 %v758_v8  ;;  %695 = vmatprep.subr.bf16.mxu0 %v803_v1 }
   0xa   :  { %689 = vmatprep.subr.bf16.mxu1 %v803_v1 }
   0xb   :  { %682 = vmatmul.mubr.msk.bf16.vlgmr.msra.gmra.mxu0 %vm44_vm2, %v759_v10 }
   0xc   :  { %696 = vmatpush3.bf16.msra.mxu0 %v188_v12  ;;  %699 = vmatprep.mubr.msk.bf16.mxu0 %vm805_vm1, %v803_v1 }
   0xd   :  { %690 = vmatpush3.bf16.msra.mxu1 %v760_v11  ;;  %697 = vmatprep.subr.bf16.mxu0 %v803_v1 }
   0xe   :  { %703 = vmatprep.subr.bf16.mxu1 %v803_v1 }
  0x10   :  { %692 = vmatmul.mubr.msk.bf16.vlgmr.msra.gmra.mxu1 %vm122_vm3, %v876_v14  ;;  %698 = vmatpush3.bf16.msra.mxu0 %v763_v15 }
  0x11   :  { %704 = vmatpush3.bf16.msra.mxu1 %v253_v17  ;;  %713 = vmatprep.subr.bf16.mxu0 %v803_v1 }
  0x12   :  { %705 = vmatprep.subr.bf16.mxu1 %v803_v1  ;;  %709 = vmatprep.mubr.msk.bf16.mxu1 %vm805_vm1, %v803_v1 }
  0x13   :  { %700 = vmatmul.mubr.msk.bf16.vlgmr.msra.gmra.mxu0 %vm44_vm2, %v759_v10 }
  0x14   :  { %9 = vsyncpa [#allocation3], 0  ;;  %714 = vmatpush3.bf16.msra.mxu0 %v314_v18  ;;  %v768_v20 = vld [vmem:[%s965_s2 + $0x18] sm:$0xff]   ;;  %717 = vmatprep.mubr.msk.bf16.mxu0 %vm805_vm1, %v803_v1  ;;  %v770_v23 = vld [vmem:[%s965_s2 + $0x2c] ss:$0 sps:$4 sm:$0x11]  }
  0x15   :  { %v769_v21 = vld [vmem:[%s966_s3 + $0x38] ss:$0 sps:$4 sm:$0x11]   ;;  %706 = vmatpush3.bf16.msra.mxu1 %v765_v19  ;;  %715 = vmatprep.subr.bf16.mxu0 %v803_v1  ;;  %v440_v25 = vand.u32 %v770_v23, %v839_v3  ;;  %v771_v26 = vld [vmem:[%s966_s3 + $0x30] sm:$0xff]   ;;  %v772_v27 = vld [vmem:[%s965_s2 + $0x24] sm:$0xff]  }
  0x16   :  { %v767_v22 = vld [vmem:[%s966_s3 + $0x14] sm:$0xff]   ;;  %707 = vmatprep.subr.bf16.mxu1 %v803_v1  ;;  %v379_v24 = vand.u32 %v769_v21, %v839_v3  ;;  %v774_v28 = vld [vmem:[%s966_s3 + $0x4c] ss:$0 sps:$4 sm:$0x11]   ;;  %v775_v31 = vld [vmem:[%s966_s3 + $0x44] sm:$0xff]  }
  0x17   :  { %v773_v29 = vld [vmem:[%s966_s3 + $0x28] sm:$0xff]   ;;  %v505_v30 = vand.u32 %v774_v28, %v839_v3  ;;  %v776_v32 = vld [vmem:[%s966_s3 + $0x3c] sm:$0xff]   ;;  %s806_s3 = smov [#allocation2]  }
  0x18   :  { %716 = vmatpush3.bf16.msra.mxu0 %v768_v20  ;;  %s584_s30 = sshll.u32 %s806_s3, 4  ;;  %s585_s30 = int_to_ptr.vmem [resolvable:$true] %s584_s30 }
  0x19   :  { %708 = vmatpush3.bf16.msra.mxu1 %v767_v22  ;;  %721 = vmatprep.subr.bf16.mxu0 %v803_v1  ;;  %s781_s5 = scalar_lea.vmem %s585_s30, 256  ;;  %p786_p1 = scmp.lt.s32.totalorder %s585_s30, %s585_s30 }
  0x1a   :  { %731 = vmatprep.subr.bf16.mxu1 %v803_v1  ;;  %p782_p0 = scmp.ne.s32.totalorder %s585_s30, %s781_s5  ;;  %p787_p2 = scmp.lt.s32.totalorder %s781_s5, %s781_s5 }
  0x1b   :  { %718 = vmatmul.mubr.msk.bf16.vlgmr.msra.gmra.mxu0 %vm44_vm2, %v759_v10 }
  0x1c   :  { %710 = vmatmul.mubr.msk.bf16.vlgmr.msra.gmra.mxu1 %vm122_vm3, %v876_v14  ;;  %722 = vmatpush3.bf16.msra.mxu0 %v379_v24  ;;  %p788_p3 = por %p787_p2, %p786_p1 }
  0x1d   :  { %732 = vmatpush3.bf16.msra.mxu1 %v440_v25  ;;  %723 = vmatprep.subr.bf16.mxu0 %v803_v1 }
  0x1e   :  { %733 = vmatprep.subr.bf16.mxu1 %v803_v1  ;;  %735 = vmatprep.mubr.msk.bf16.mxu1 %vm805_vm1, %v803_v1  ;;  %p789_p4 = pnand %p788_p3, %p782_p0 }
  0x1f   :  { %727 = vmatprep.mubr.msk.bf16.mxu0 %vm805_vm1, %v803_v1 }
  0x20   :  { %724 = vmatpush3.bf16.msra.mxu0 %v771_v26 }
  0x21   :  { %734 = vmatpush3.bf16.msra.mxu1 %v772_v27  ;;  %725 = vmatprep.subr.bf16.mxu0 %v803_v1 }
  0x22   :  { %739 = vmatprep.subr.bf16.mxu1 %v803_v1 }
  0x24   :  { %736 = vmatmul.mubr.msk.bf16.vlgmr.msra.gmra.mxu1 %vm44_vm2, %v759_v10  ;;  %726 = vmatpush3.bf16.msra.mxu0 %v773_v29 }
  0x25   :  { %740 = vmatpush3.bf16.msra.mxu1 %v505_v30  ;;  %745 = vmatprep.mubr.msk.bf16.mxu1 %vm805_vm1, %v803_v1 }
  0x26   :  { %741 = vmatprep.subr.bf16.mxu1 %v803_v1 }
  0x27   :  { %728 = vmatmul.mubr.msk.bf16.vlgmr.msra.gmra.mxu0 %vm122_vm3, %v876_v14 }
  0x29   :  { %742 = vmatpush3.bf16.msra.mxu1 %v775_v31 }
  0x2a   :  { %743 = vmatprep.subr.bf16.mxu1 %v803_v1 }
  0x2d   :  { %744 = vmatpush3.bf16.msra.mxu1 %v776_v32 }
  0x30   :  { %746 = vmatmul.mubr.msk.bf16.vlgmr.msra.gmra.mxu1 %vm122_vm3, %v876_v14 }
  0xcb   :  { %v88_v33 = vpop.f32.mrf.mxu0 }
  0xcd   :  { %v683_v34 = vpop.f32.mrf.mxu0 }
  0xcf   :  { %v91_v35 = vpop.f32.mrf.mxu0 }
  0xd0   :  { %v163_v36 = vpop.f32.mrf.mxu1 }
  0xd1   :  { %v684_v37 = vpop.f32.mrf.mxu0  ;;  %v170_v61 = vmul.f32 %v163_v36, %v88_v33 }
  0xd2   :  { %v693_v38 = vpop.f32.mrf.mxu1 }
  0xd3   :  { %v224_v39 = vpop.f32.mrf.mxu0 }
  0xd4   :  { %v166_v40 = vpop.f32.mrf.mxu1 }
  0xd5   :  { %v701_v41 = vpop.f32.mrf.mxu0  ;;  %v171_v3 = vmul.f32 %v166_v40, %v91_v35 }
  0xd6   :  { %v694_v42 = vpop.f32.mrf.mxu1 }
  0xd7   :  { %v227_v43 = vpop.f32.mrf.mxu0 }
  0xd9   :  { %v702_v44 = vpop.f32.mrf.mxu0 }
  0xdb   :  { %v350_v45 = vpop.f32.mrf.mxu0 }
  0xdc   :  { %v289_v46 = vpop.f32.mrf.mxu1 }
  0xdd   :  { %v719_v47 = vpop.f32.mrf.mxu0  ;;  %v296_v59 = vmul.f32 %v289_v46, %v224_v39 }
  0xde   :  { %v711_v48 = vpop.f32.mrf.mxu1 }
  0xdf   :  { %v353_v49 = vpop.f32.mrf.mxu0  ;;  %v298_v0 = vadd.f32 %v296_v59, %v170_v61 }
  0xe0   :  { %v292_v50 = vpop.f32.mrf.mxu1 }
  0xe1   :  { %v720_v51 = vpop.f32.mrf.mxu0  ;;  %v297_v1 = vmul.f32 %v292_v50, %v227_v43 }
  0xe2   :  { %v712_v52 = vpop.f32.mrf.mxu1 }
  0xe3   :  { %v299_v8 = vadd.f32 %v297_v1, %v171_v3 }
  0xe4   :  { %v476_v53 = vpop.f32.mrf.mxu1 }
  0xe6   :  { %v737_v54 = vpop.f32.mrf.mxu1 }
  0xe7   :  { %v415_v55 = vpop.f32.mrf.mxu0 }
  0xe8   :  { %v479_v56 = vpop.f32.mrf.mxu1  ;;  %v422_v62 = vmul.f32 %v415_v55, %v350_v45 }
  0xe9   :  { %v729_v57 = vpop.f32.mrf.mxu0 }
  0xea   :  { %v738_v58 = vpop.f32.mrf.mxu1  ;;  %v424_v4 = vadd.f32 %v422_v62, %v298_v0 }
  0xeb   :  { %v418_v60 = vpop.f32.mrf.mxu0 }
  0xec   :  { %v423_v5 = vmul.f32 %v418_v60, %v353_v49 }
  0xed   :  { %v730_v63 = vpop.f32.mrf.mxu0 }
  0xee   :  { %v425_v11 = vadd.f32 %v423_v5, %v299_v8 }
  0xf0   :  { %v541_v2 = vpop.f32.mrf.mxu1 }
  0xf1   :  { %v548_v6 = vmul.f32 %v541_v2, %v476_v53 }
  0xf2   :  { %v747_v7 = vpop.f32.mrf.mxu1 }
  0xf3   :  { %v550_v9 = vadd.f32 %v548_v6, %v424_v4 }
  0xf4   :  { %v544_v10 = vpop.f32.mrf.mxu1 }
  0xf5   :  { %v549_v12 = vmul.f32 %v544_v10, %v479_v56  ;;  %v563_v15 = vmul.f32 0.25, %v550_v9 }
  0xf6   :  { %v748_v13 = vpop.f32.mrf.mxu1 }
  0xf7   :  { %v551_v14 = vadd.f32 %v549_v12, %v425_v11  ;;  %v565_v16 = vmul.f32 %v563_v15, %v563_v15 }
  0xf9   :  { %567 = vadd.xlane.f32.xlu0 %v565_v16  ;;  %v564_v17 = vmul.f32 0.25, %v551_v14 }
  0xfb   :  { %v566_v18 = vmul.f32 %v564_v17, %v564_v17 }
  0xfd   :  { %569 = vadd.xlane.f32.xlu0 %v566_v18 }
 0x182   :  { %v568_v19 = vpop.xlane.xlu0 %567 }
 0x183   :  { %v571_v20 = vmax.f32 %v568_v19, 1e-24 }
 0x185   :  { %777 = vrsqrt.f32 %v571_v20 }
 0x186   :  { %v570_v21 = vpop.xlane.xlu0 %569 }
 0x187   :  { %v572_v22 = vmax.f32 %v570_v21, 1e-24 }
 0x189   :  { %779 = vrsqrt.f32 %v572_v22 }
 0x192   :  { %v778_v23 = vpop.eup %777 }
 0x193   :  { %v575_v24 = vmul.f32 %v778_v23, %v563_v15 }
 0x195   :  { %577 = vst [vmem:[#allocation2] sm:$0xff] %v575_v24 }
 0x196   :  { %v780_v25 = vpop.eup %779 }
 0x197   :  { %v576_v26 = vmul.f32 %v780_v25, %v564_v17 }
 0x199   :  { %578 = vst [vmem:[#allocation2 + $0x8] sm:$0xff] %v576_v26 }
 0x19a   :  { %792 = shalt.err (!%p789_p4)
}
 0x19b   :  { %s807_s6 = smov 128   ;;  %s808_s0 = smov 8  }
 0x19c   :  { %590 = dma.vmem_to_hbm [thread:$0]  %s585_s30, 256, %s967_s4, [#allocation3], %s807_s6, %s807_s6, %s808_s0  }
 0x19d   :  { %801 = dma.done.wait [#allocation3], 256  }
 0x19e   :  { %802 = vsyncadd [#allocation3], 4294967040 }
 0x19f   :  { %594 = vsyncpa [#allocation3], 1 }

</bundles_post_ra>
